<compile_context>
chip_gen: v5e
topology: v5e:2x2
jax: 0.10.0
libtpu: 0.0.40
codegen_flags: <defaults>
</compile_context>

<pallas_src>
import functools
import math

import numpy as np
import jax
import jax.numpy as jnp
from jax.experimental import pallas as pl
from jax.experimental.pallas import tpu as pltpu

LANES = 128
MAX_TILE_R = 2048        # rows (of 128 lanes) per grid step; 2048*128*5 B ≈ 1.3 MB / step
NUM_SLICES = 2           # "parallel" grid axis (v7x megacore); serial and harmless on v5e/v6e


def _round_up(x: int, m: int) -> int:
    return ((x + m - 1) // m) * m


def _focal_loss_kernel(w_ref, code_ref, loss_ref, cnt_ref, *, alpha, gamma):
    t = pl.program_id(1)

    @pl.when(t == 0)
    def _init():
        loss_ref[...] = jnp.zeros_like(loss_ref)
        cnt_ref[...] = jnp.zeros_like(cnt_ref)

    w = w_ref[...]                                   # (tile_r, 128) f32 probabilities
    code = code_ref[...].astype(jnp.int32)           # int8 stream: bit0 = y, bit1 = pos_weight

    # torch.isclose(w, 0) -> |w| <= 1e-8 ; torch.isclose(w, 1) -> |w - 1| <= 1e-8 + 1e-5
    mask = (jnp.abs(w) > jnp.float32(1e-8)) & (jnp.abs(w - 1.0) > jnp.float32(1e-8 + 1e-5))
    w_safe = jnp.where(mask, w, jnp.float32(0.5))    # keep log finite on masked/padded lanes

    y_pos = code >= 1                                # code ∈ {0,1,3}; zero padding -> False
    pw = (code >= 2).astype(jnp.float32)

    # y ∈ {0,1}: exactly one focal term can be nonzero -> a single EUP log per element.
    p_sel = jnp.where(y_pos, w_safe, 1.0 - w_safe)
    q_sel = 1.0 - p_sel
    scale = jnp.where(y_pos, jnp.float32(alpha) * pw, jnp.float32(1.0 - alpha))

    g = float(gamma)
    if g == 2.0:                                     # default: two VPU multiplies, no pow
        q_pow = q_sel * q_sel
    elif g == 1.0:
        q_pow = q_sel
    elif g == 0.0:
        q_pow = jnp.ones_like(q_sel)
    else:
        q_pow = q_sel ** g

    loss_el = jnp.where(mask, -scale * q_pow * jnp.log(p_sel), 0.0)
    cnt_el = mask.astype(jnp.float32)

    # Fold (tile_r, 128) -> (8, 128) with vreg-wise VPU adds (no XLU reduce) and accumulate
    # straight into this slice's resident output blocks.
    r = loss_el.shape[0] // 8
    loss_ref[...] += loss_el.reshape(r, 8, LANES).sum(axis=0)[None]
    cnt_ref[...] += cnt_el.reshape(r, 8, LANES).sum(axis=0)[None]


def falsify_low_pt_edges(*, y, edge_index, pt, pt_thld=0.0):
    """JAX mirror of the torch helper (boolean result)."""
    y_b = jnp.asarray(y) > 0
    if math.isclose(float(pt_thld), 0.0):
        return y_b
    # TODO(synk): data-dependent gather pt[edge_index[0]] stays in the JAX wrapper (a tiny
    # O(E) op; an in-kernel VMEM gather adds complexity for no gain on this mem-bound loss).
    pt_src = jnp.take(jnp.asarray(pt, jnp.float32), edge_index[0, :])
    return y_b & (pt_src > jnp.float32(pt_thld))


def haughty_focal_loss(*, w, y, edge_index, pt, alpha=0.25, gamma=2.0, pt_thld=0.0):
    """Pallas implementation of HaughtyFocalLoss.forward."""
    w = jnp.asarray(w, jnp.float32)
    y_b = jnp.asarray(y) > 0
    pw_b = falsify_low_pt_edges(y=y, edge_index=edge_index, pt=pt, pt_thld=pt_thld)
    code = y_b.astype(jnp.int8) + 2 * pw_b.astype(jnp.int8)          # values in {0, 1, 3}

    e = w.shape[0]
    rows = -(-e // LANES)                                            # ceil(E / 128)
    tiles_per_slice = -(-rows // (NUM_SLICES * MAX_TILE_R))
    tile_r = _round_up(-(-rows // (NUM_SLICES * tiles_per_slice)), 32)   # int8 sublane tile = 32
    rows_pad = NUM_SLICES * tiles_per_slice * tile_r
    pad = rows_pad * LANES - e

    # Minimal, fusable zero-padding; padded w == 0 is excluded by the in-kernel isclose mask.
    w2 = jnp.pad(w, (0, pad)).reshape(rows_pad, LANES)
    code2 = jnp.pad(code, (0, pad)).reshape(rows_pad, LANES)

    kernel = functools.partial(_focal_loss_kernel, alpha=float(alpha), gamma=float(gamma))
    loss_part, cnt_part = pl.pallas_call(
        kernel,
        out_shape=(
            jax.ShapeDtypeStruct((NUM_SLICES, 8, LANES), jnp.float32),
            jax.ShapeDtypeStruct((NUM_SLICES, 8, LANES), jnp.float32),
        ),
        grid_spec=pltpu.PrefetchScalarGridSpec(
            num_scalar_prefetch=0,
            grid=(NUM_SLICES, tiles_per_slice),
            in_specs=[
                pl.BlockSpec((tile_r, LANES), lambda c, t: (c * tiles_per_slice + t, 0)),
                pl.BlockSpec((tile_r, LANES), lambda c, t: (c * tiles_per_slice + t, 0)),
            ],
            out_specs=(
                pl.BlockSpec((1, 8, LANES), lambda c, t: (c, 0, 0)),
                pl.BlockSpec((1, 8, LANES), lambda c, t: (c, 0, 0)),
            ),
        ),
        compiler_params=pltpu.CompilerParams(
            dimension_semantics=("parallel", "arbitrary"),
            allow_input_fusion=[True, True],
        ),
        cost_estimate=pl.CostEstimate(
            flops=15 * e,
            transcendentals=e,
            bytes_accessed=rows_pad * LANES * 5 + 2 * NUM_SLICES * 8 * LANES * 4,
        ),
    )(w2, code2)

    # Tiny (2, 8, 128) partial reduction + mean in the wrapper.
    # NOTE: an all-masked input yields NaN, matching torch.mean over an empty tensor.
    return jnp.sum(loss_part) / jnp.sum(cnt_part)


class HaughtyFocalLoss:
    """Drop-in style wrapper mirroring the torch module's forward signature."""

    def __init__(self, *, alpha: float = 0.25, gamma: float = 2.0, pt_thld: float = 0.0):
        self._alpha = alpha
        self._gamma = gamma
        self._pt_thld = pt_thld

    def __call__(self, *, w, y, edge_index, pt, **kwargs):
        return haughty_focal_loss(
            w=w, y=y, edge_index=edge_index, pt=pt,
            alpha=self._alpha, gamma=self._gamma, pt_thld=self._pt_thld,
        )


def _reference_loss(w, y, edge_index, pt, *, alpha, gamma, pt_thld):
    """Pure numpy (f64) mirror of the torch HaughtyFocalLoss forward, for verification."""
    w = np.asarray(w, np.float64)
    y = np.asarray(y, np.float64)
    pt = np.asarray(pt, np.float64)
    ei = np.asarray(edge_index)
    if math.isclose(float(pt_thld), 0.0):
        pw = y.copy()
    else:
        pw = ((y > 0) & (pt[ei[0, :]] > pt_thld)).astype(np.float64)
    mask = ~((np.abs(w) <= 1e-8) | (np.abs(w - 1.0) <= 1e-8 + 1e-5))
    wi, ti, pwi = w[mask], y[mask], pw[mask]
    pos = -alpha * pwi * (1.0 - wi) ** gamma * ti * np.log(wi)
    neg = -(1.0 - alpha) * wi ** gamma * (1.0 - ti) * np.log(1.0 - wi)
    return float(np.mean(pos + neg))


if __name__ == "__main__":
    key = jax.random.PRNGKey(0)
    k1, k2, k3, k4 = jax.random.split(key, 4)

    n_hits, n_edges = 64, 300
    w = jax.random.uniform(k1, (n_edges,), dtype=jnp.float32, minval=1e-4, maxval=1.0 - 1e-4)
    # inject exact outliers to exercise the isclose(0/1) masking path
    w = w.at[0].set(0.0).at[1].set(1.0).at[2].set(5e-9)
    y = (jax.random.uniform(k2, (n_edges,)) < 0.4).astype(jnp.float32)
    edge_index = jax.random.randint(k3, (2, n_edges), 0, n_hits).astype(jnp.int32)
    pt = jax.random.uniform(k4, (n_hits,), dtype=jnp.float32, minval=0.0, maxval=3.0)

    for pt_thld in (1.0, 0.0):   # exercise both the pt-cut and the default (pw == y) paths
        loss_mod = HaughtyFocalLoss(alpha=0.25, gamma=2.0, pt_thld=pt_thld)
        loss = jax.block_until_ready(loss_mod(w=w, y=y, edge_index=edge_index, pt=pt))
        ref = _reference_loss(np.asarray(w), np.asarray(y), np.asarray(edge_index),
                              np.asarray(pt), alpha=0.25, gamma=2.0, pt_thld=pt_thld)
        assert abs(float(loss) - ref) < 1e-4, (pt_thld, float(loss), ref)
    print("KERNEL_OK")
</pallas_src>

<mosaic_0001>
module attributes {stable_mosaic.version = 11 : i64} {
  func.func @_focal_loss_kernel(%arg0: i32, %arg1: i32, %arg2: memref<32x128xf32, #tpu.memory_space<vmem>>, %arg3: memref<32x128xi8, #tpu.memory_space<vmem>>, %arg4: memref<1x8x128xf32, #tpu.memory_space<vmem>>, %arg5: memref<1x8x128xf32, #tpu.memory_space<vmem>>) attributes {dimension_semantics = [#tpu.dimension_semantics<parallel>, #tpu.dimension_semantics<arbitrary>], iteration_bounds = array<i64: 2, 1>, scalar_prefetch = 0 : i64, scratch_operands = 0 : i64, tpu.core_type = #tpu.core_type<tc>, window_params = [{transform_indices = @transform_0, window_bounds = array<i64: 32, 128>}, {transform_indices = @transform_1, window_bounds = array<i64: 32, 128>}, {transform_indices = @transform_2, window_bounds = array<i64: 1, 8, 128>}, {transform_indices = @transform_3, window_bounds = array<i64: 1, 8, 128>}]} {
    %c0_i32 = arith.constant 0 : i32
    %0 = arith.cmpi eq, %arg1, %c0_i32 : i32
    %1 = arith.extui %0 : i1 to i32
    %c0_i32_0 = arith.constant 0 : i32
    %2 = arith.cmpi ne, %1, %c0_i32_0 : i32
    scf.if %2 {
      %cst_27 = arith.constant 0.000000e+00 : f32
      %54 = vector.broadcast %cst_27 : f32 to vector<1x8x128xf32>
      %c0_28 = arith.constant 0 : index
      %c0_29 = arith.constant 0 : index
      %c0_30 = arith.constant 0 : index
      %55 = vector.load %arg4[%c0_28, %c0_29, %c0_30] : memref<1x8x128xf32, #tpu.memory_space<vmem>>, vector<1x8x128xf32>
      tpu.vector_store %arg4[%c0_28, %c0_29, %c0_30], %54 {strides = array<i32>} : memref<1x8x128xf32, #tpu.memory_space<vmem>>, vector<1x8x128xf32>,
      %cst_31 = arith.constant 0.000000e+00 : f32
      %56 = vector.broadcast %cst_31 : f32 to vector<1x8x128xf32>
      %c0_32 = arith.constant 0 : index
      %c0_33 = arith.constant 0 : index
      %c0_34 = arith.constant 0 : index
      %57 = vector.load %arg5[%c0_32, %c0_33, %c0_34] : memref<1x8x128xf32, #tpu.memory_space<vmem>>, vector<1x8x128xf32>
      tpu.vector_store %arg5[%c0_32, %c0_33, %c0_34], %56 {strides = array<i32>} : memref<1x8x128xf32, #tpu.memory_space<vmem>>, vector<1x8x128xf32>,
    } else {
    }
    %c0 = arith.constant 0 : index
    %c0_1 = arith.constant 0 : index
    %3 = vector.load %arg2[%c0, %c0_1] : memref<32x128xf32, #tpu.memory_space<vmem>>, vector<32x128xf32>
    %c0_2 = arith.constant 0 : index
    %c0_3 = arith.constant 0 : index
    %4 = vector.load %arg3[%c0_2, %c0_3] : memref<32x128xi8, #tpu.memory_space<vmem>>, vector<32x128xi8>
    %5 = arith.extsi %4 : vector<32x128xi8> to vector<32x128xi32>
    %6 = math.absf %3 : vector<32x128xf32>
    %cst = arith.constant 9.99999993E-9 : f32
    %7 = vector.broadcast %cst : f32 to vector<32x128xf32>
    %8 = arith.cmpf ogt, %6, %7 : vector<32x128xf32>
    %cst_4 = arith.constant 1.000000e+00 : f32
    %9 = vector.broadcast %cst_4 : f32 to vector<32x128xf32>
    %10 = arith.subf %3, %9 : vector<32x128xf32>
    %11 = math.absf %10 : vector<32x128xf32>
    %cst_5 = arith.constant 1.001000e-05 : f32
    %12 = vector.broadcast %cst_5 : f32 to vector<32x128xf32>
    %13 = arith.cmpf ogt, %11, %12 : vector<32x128xf32>
    %14 = arith.andi %8, %13 : vector<32x128xi1>
    %cst_6 = arith.constant 5.000000e-01 : f32
    %15 = vector.broadcast %cst_6 : f32 to vector<32x128xf32>
    %16 = arith.select %14, %3, %15 : vector<32x128xi1>, vector<32x128xf32>
    %c1_i32 = arith.constant 1 : i32
    %17 = vector.broadcast %c1_i32 : i32 to vector<32x128xi32>
    %18 = arith.cmpi sge, %5, %17 : vector<32x128xi32>
    %c2_i32 = arith.constant 2 : i32
    %19 = vector.broadcast %c2_i32 : i32 to vector<32x128xi32>
    %20 = arith.cmpi sge, %5, %19 : vector<32x128xi32>
    %21 = arith.extui %20 : vector<32x128xi1> to vector<32x128xi32>
    %22 = arith.sitofp %21 : vector<32x128xi32> to vector<32x128xf32>
    %cst_7 = arith.constant 1.000000e+00 : f32
    %23 = vector.broadcast %cst_7 : f32 to vector<32x128xf32>
    %24 = arith.subf %23, %16 : vector<32x128xf32>
    %25 = arith.select %18, %16, %24 : vector<32x128xi1>, vector<32x128xf32>
    %cst_8 = arith.constant 1.000000e+00 : f32
    %26 = vector.broadcast %cst_8 : f32 to vector<32x128xf32>
    %27 = arith.subf %26, %25 : vector<32x128xf32>
    %cst_9 = arith.constant 2.500000e-01 : f32
    %28 = vector.broadcast %cst_9 : f32 to vector<32x128xf32>
    %29 = arith.mulf %28, %22 : vector<32x128xf32>
    %cst_10 = arith.constant 7.500000e-01 : f32
    %30 = vector.broadcast %cst_10 : f32 to vector<32x128xf32>
    %31 = arith.select %18, %29, %30 : vector<32x128xi1>, vector<32x128xf32>
    %32 = arith.mulf %27, %27 : vector<32x128xf32>
    %cst_11 = arith.constant 0.000000e+00 : f32
    %33 = vector.broadcast %cst_11 : f32 to vector<32x128xf32>
    %34 = arith.subf %33, %31 : vector<32x128xf32>
    %35 = arith.mulf %34, %32 : vector<32x128xf32>
    %36 = math.log %25 : vector<32x128xf32>
    %37 = arith.mulf %35, %36 : vector<32x128xf32>
    %cst_12 = arith.constant 0.000000e+00 : f32
    %38 = vector.broadcast %cst_12 : f32 to vector<32x128xf32>
    %39 = arith.select %14, %37, %38 : vector<32x128xi1>, vector<32x128xf32>
    %40 = arith.extui %14 : vector<32x128xi1> to vector<32x128xi32>
    %41 = arith.sitofp %40 : vector<32x128xi32> to vector<32x128xf32>
    %c0_13 = arith.constant 0 : index
    %c0_14 = arith.constant 0 : index
    %c0_15 = arith.constant 0 : index
    %42 = vector.load %arg4[%c0_13, %c0_14, %c0_15] : memref<1x8x128xf32, #tpu.memory_space<vmem>>, vector<1x8x128xf32>
    %43 = vector.shape_cast %39 : vector<32x128xf32> to vector<4x8x128xf32>
    %cst_16 = arith.constant dense<0.000000e+00> : vector<8x128xf32>
    %44 = vector.multi_reduction <add>, %43, %cst_16 [0] : vector<4x8x128xf32> to vector<8x128xf32>
    %45 = vector.shape_cast %44 : vector<8x128xf32> to vector<1x8x128xf32>
    %46 = arith.addf %42, %45 : vector<1x8x128xf32>
    %c0_17 = arith.constant 0 : index
    %c0_18 = arith.constant 0 : index
    %c0_19 = arith.constant 0 : index
    %47 = vector.load %arg4[%c0_17, %c0_18, %c0_19] : memref<1x8x128xf32, #tpu.memory_space<vmem>>, vector<1x8x128xf32>
    tpu.vector_store %arg4[%c0_17, %c0_18, %c0_19], %46 {strides = array<i32>} : memref<1x8x128xf32, #tpu.memory_space<vmem>>, vector<1x8x128xf32>,
    %c0_20 = arith.constant 0 : index
    %c0_21 = arith.constant 0 : index
    %c0_22 = arith.constant 0 : index
    %48 = vector.load %arg5[%c0_20, %c0_21, %c0_22] : memref<1x8x128xf32, #tpu.memory_space<vmem>>, vector<1x8x128xf32>
    %49 = vector.shape_cast %41 : vector<32x128xf32> to vector<4x8x128xf32>
    %cst_23 = arith.constant dense<0.000000e+00> : vector<8x128xf32>
    %50 = vector.multi_reduction <add>, %49, %cst_23 [0] : vector<4x8x128xf32> to vector<8x128xf32>
    %51 = vector.shape_cast %50 : vector<8x128xf32> to vector<1x8x128xf32>
    %52 = arith.addf %48, %51 : vector<1x8x128xf32>
    %c0_24 = arith.constant 0 : index
    %c0_25 = arith.constant 0 : index
    %c0_26 = arith.constant 0 : index
    %53 = vector.load %arg5[%c0_24, %c0_25, %c0_26] : memref<1x8x128xf32, #tpu.memory_space<vmem>>, vector<1x8x128xf32>
    tpu.vector_store %arg5[%c0_24, %c0_25, %c0_26], %52 {strides = array<i32>} : memref<1x8x128xf32, #tpu.memory_space<vmem>>, vector<1x8x128xf32>,
    return
  }
  func.func @transform_0(%arg0: i32, %arg1: i32) -> (i32, i32) {
    %c1_i32 = arith.constant 1 : i32
    %0 = arith.muli %arg0, %c1_i32 : i32
    %1 = arith.addi %0, %arg1 : i32
    %c0_i32 = arith.constant 0 : i32
    %c0_i32_0 = arith.constant 0 : i32
    return %1, %c0_i32 : i32, i32
  }
  func.func @transform_1(%arg0: i32, %arg1: i32) -> (i32, i32) {
    %c1_i32 = arith.constant 1 : i32
    %0 = arith.muli %arg0, %c1_i32 : i32
    %1 = arith.addi %0, %arg1 : i32
    %c0_i32 = arith.constant 0 : i32
    %c0_i32_0 = arith.constant 0 : i32
    return %1, %c0_i32 : i32, i32
  }
  func.func @transform_2(%arg0: i32, %arg1: i32) -> (i32, i32, i32) {
    %c0_i32 = arith.constant 0 : i32
    %c0_i32_0 = arith.constant 0 : i32
    %c0_i32_1 = arith.constant 0 : i32
    return %arg0, %c0_i32, %c0_i32_0 : i32, i32, i32
  }
  func.func @transform_3(%arg0: i32, %arg1: i32) -> (i32, i32, i32) {
    %c0_i32 = arith.constant 0 : i32
    %c0_i32_0 = arith.constant 0 : i32
    %c0_i32_1 = arith.constant 0 : i32
    return %arg0, %c0_i32, %c0_i32_0 : i32, i32, i32
  }
}

</mosaic_0001>

<bundles_post_ra>
// kernel: tpu_custom_call.1
= control target key start
LH: loop header
LB: loop body
LE: loop exit
PB: predicated region body
PF: predicated region fallthrough
CT: control target
= control target key end

     0   :  { %9 = vsyncpa [#allocation3], 0  ;;  %s1145_s0 = inlined_call_operand.hbm [shape: f32[64,128], index: 0, kind: input, shape index: {}]   ;;  %s1146_s1 = inlined_call_operand.hbm [shape: s8[64,128], index: 1, kind: input, shape index: {}]   ;;  %s1147_s2 = inlined_call_operand.hbm [shape: f32[2,8,128], index: 2, kind: output, shape index: {0}]   ;;  %s1148_s3 = inlined_call_operand.hbm [shape: f32[2,8,128], index: 3, kind: output, shape index: {1}]  }
   0x1   :  { %11 = vsyncpa [#allocation3 + $0x1], 0 }
   0x2   :  { %12 = vsyncpa [#allocation6], 0 }
   0x3   :  { %14 = vsyncpa [#allocation6 + $0x1], 0 }
   0x4   :  { %15 = vsyncpa [#allocation4], 0 }
   0x5   :  { %17 = vsyncpa [#allocation4 + $0x1], 0 }
   0x6   :  { %18 = vsyncpa [#allocation9], 0 }
   0x7   :  { %20 = vsyncpa [#allocation9 + $0x1], 0  ;;  %s879_s12 = smov 0   ;;  %s881_s13 = smov 0  }
   0x8   :  { %s883_s14 = smov 0   ;;  %s885_s15 = smov 0  }
   0x9   :  { %s887_s16 = smov 0   ;;  %s889_s17 = smov 0  }
   0xa LB: > { %s560_s18 = sadd.s32 4294967295, %s854_s17   ;;  %s561_s19 = sadd.s32 4294967294, %s854_s17   ;;  %s854_s17 = sphi %s889_s17, %s26_s17   ;;  %s850_s16 = sphi %s887_s16, %s1184_s16   ;;  %s846_s15 = sphi %s885_s15, %s1183_s15   ;;  %s842_s14 = sphi %s883_s14, %s1182_s14   ;;  %s838_s13 = sphi %s881_s13, %s1181_s13   ;;  %s834_s12 = sphi %s879_s12, %s1180_s12  }
   0xb   : > { %s38_s20 = sadd.s32 1, %s850_s16  ;;  %s47_s21 = sadd.s32 1, %s842_s14 }
   0xc   : > { %p40_p0 = scmp.ge.s32.totalorder %s38_s20, 2  ;;  %p54_p1 = scmp.ne.s32.totalorder %s842_s14, %s838_s13 }
   0xd   : > { %p55_p2 = scmp.eq.s32.totalorder %s854_s17, 0  ;;  %p60_p3 = scmp.ne.s32.totalorder %s838_s13, %s834_s12 }
   0xe   : > { %s1186_s20 = smov (%p40_p0, %s38_s20), 0  ;;  %p61_p5 = scmp.eq.s32.totalorder %s560_s18, 0 }
   0xf   : > { %p920_p4 = por %p55_p2, %p54_p1  ;;  %s44_s23 = ssub.s32 %s850_s16, %s1186_s20 }
  0x10   : > { %p112_p6 = scmp.eq.s32.totalorder %s560_s18, 1  ;;  %p45_p7 = scmp.eq.s32.totalorder %s44_s23, 0 }
  0x11   : > { %p926_p8 = por %p61_p5, %p60_p3  ;;  %p118_p10 = scmp.eq.s32.totalorder %s561_s19, 1 }
  0x12   : > { %p930_p9 = por %p112_p6, %p54_p1  ;;  %p563_p12 = scmp.ge.s32.totalorder %s854_s17, 2 }
  0x13   : > { %s935_s26 = scalar_select %p45_p7, %s842_s14, %s47_s21  }
  0x14   : > { %p937_p11 = por %p118_p10, %p60_p3  ;;  %p615_p13 = scmp.lt.s32.totalorder %s854_s17, 2 }
  0x15   : > { %s164_s28 = sand.u32 1, %s842_s14   ;;  %s592_s30 = sshll.u32 %s850_s16, 5 }
  0x16   : > { %s564_s29 = sshll.u32 %s164_s28, 5  ;;  %s174_s6 = scalar_lea.hbm %s1145_s0, %s592_s30 }
  0x17   : > { %s168_s7 = scalar_lea.vmem [#allocation2], %s564_s29  ;;  %s175_s9 = sshll.u32 %s174_s6, 4  ;;  %s176_s9 = int_to_ptr.hbm [resolvable:$true] %s175_s9 }
  0x18   : > { %s177_s8 = sshll.u32 %s168_s7, 4  ;;  %p950_p0 = pnand %p615_p13, %p920_p4  ;;  %s178_s8 = int_to_ptr.vmem [resolvable:$true] %s177_s8 }
  0x19   : > { %p569_p1 = scmp.ge.s32.totalorder %s854_s17, 1  ;;  %s165_s11 = scalar_lea.sflag [#allocation3], %s164_s28 }
  0x1a   : > { %s856_s18 = smov 128   ;;  %s857_s19 = smov 8  }
  0x1b   : > { %604 = dma.hbm_to_vmem [thread:$0]  (!%p950_p0), %s176_s9, 512, %s178_s8, %s165_s11, %s856_s18, %s856_s18, %s857_s19  }
  0x1c   : > { %p205_p2 = scmp.lt.s32.totalorder %s854_s17, 3  ;;  %s567_s21 = sshll.u32 %s164_s28, 3 }
  0x1d   : > { %s568_s23 = sshll.u32 %s850_s16, 3  ;;  %s191_s4 = scalar_lea.vmem [#allocation5], %s567_s21 }
  0x1e   : > { %p206_p3 = pnand %p569_p1, %p205_p2  ;;  %s196_s22 = scalar_lea.hbm %s1146_s1, %s568_s23 }
  0x1f   : > { %s200_s5 = sshll.u32 %s191_s4, 4  ;;  %s198_s6 = sshll.u32 %s196_s22, 4  ;;  %s201_s5 = int_to_ptr.vmem [resolvable:$true] %s200_s5  ;;  %s199_s6 = int_to_ptr.hbm [resolvable:$true] %s198_s6 }
  0x20   : > { %s188_s7 = scalar_lea.sflag [#allocation6], %s164_s28  ;;  %209 = sbr.rel (%p206_p3) target bundleno = 86 (0x56), region = 28 }
  0x21   : > { %607 = dma.hbm_to_vmem [thread:$0]  (!%p950_p0), %s199_s6, 128, %s201_s5, %s188_s7  }
  0x22   : > { %s965_s8 = sand.u32 (!%p206_p3), 1, %s838_s13  }
  0x23   : > { %s570_s9 = sshll.u32 (!%p206_p3), %s965_s8, 5  ;;  %s212_s11 = scalar_lea.sflag (!%p206_p3), [#allocation3], %s965_s8 }
  0x24   : > { %s215_s18 = scalar_lea.vmem (!%p206_p3), [#allocation2], %s570_s9 }
  0x25   : > { %817 = dma.done.wait (%p926_p8), %s212_s11, 512  }
  0x26   : > { %819 = vsyncadd (%p926_p8), %s212_s11, 4294966784  ;;  %s974_s28 = sshll.u32 %s965_s8, 3  ;;  %s222_s10 = scalar_lea.sflag [#allocation6], %s965_s8 }
  0x27   : > { %s225_s19 = scalar_lea.vmem [#allocation5], %s974_s28 }
  0x28   : > { %821 = dma.done.wait (%p926_p8), %s222_s10, 128  }
  0x29   : > { %823 = vsyncadd (%p926_p8), %s222_s10, 4294967168  ;;  %v268_v0 = vld [vmem:[%s215_s18] sm:$0xff]  ;;  %v269_v1 = vld [vmem:[%s215_s18 + $0x8] sm:$0xff]  ;;  %v858_v29 = vmov 0.0   ;;  %s588_s24 = sshll.u32 %s846_s15, 3  ;;  %s258_s30 = scalar_lea.vmem [#allocation8], %s974_s28 }
  0x2a   : > { %v270_v2 = vld [vmem:[%s215_s18 + $0x10] sm:$0xff]  ;;  %v277_v3 = vand.u32 2147483647, %v268_v0  ;;  %v278_v4 = vand.u32 2147483647, %v269_v1  ;;  %v271_v5 = vld [vmem:[%s215_s18 + $0x18] sm:$0xff]  ;;  %s419_s29 = scalar_lea.hbm %s1148_s3, %s588_s24 }
  0x2b   : > { %v272_v6 = vld [vmem:[%s225_s19] sm:$0xff]  ;;  %v279_v7 = vand.u32 2147483647, %v270_v2  ;;  %v280_v8 = vand.u32 2147483647, %v271_v5  ;;  %v574_v9 = vadd.f32 -1.0, %v268_v0 }
  0x2c   : > { %v575_v10 = vadd.f32 -1.0, %v269_v1  ;;  %v576_v11 = vadd.f32 -1.0, %v270_v2  ;;  %v273_v12 = vunpack.c.0.s8 %v272_v6  ;;  %vm982_vm0 = vcmp.gt.f32.partialorder %v277_v3, 1e-08  ;;  %s1083_s22 = sshll.u32 %s258_s30, 4  ;;  %s423_s4 = sshll.u32 %s419_s29, 4  ;;  %s422_s22 = int_to_ptr.vmem [resolvable:$true] %s1083_s22  ;;  %s424_s4 = int_to_ptr.hbm [resolvable:$true] %s423_s4 }
  0x2d   : > { %vm986_vm1 = vcmp.gt.f32.partialorder %v278_v4, 1e-08  ;;  %v577_v15 = vadd.f32 -1.0, %v271_v5  ;;  %v274_v16 = vunpack.c.1.s8 %v272_v6  ;;  %v289_v17 = vand.u32 2147483647, %v574_v9  ;;  %s395_s5 = scalar_lea.sflag [#allocation9], %s965_s8 }
  0x2e   : > { %v290_v18 = vand.u32 2147483647, %v575_v10  ;;  %v291_v19 = vand.u32 2147483647, %v576_v11  ;;  %v275_v20 = vunpack.c.2.s8 %v272_v6  ;;  %vm990_vm2 = vcmp.gt.f32.partialorder %v279_v7, 1e-08 }
  0x2f   : > { %vm994_vm3 = vcmp.gt.f32.partialorder %v280_v8, 1e-08  ;;  %v292_v23 = vand.u32 2147483647, %v577_v15  ;;  %v276_v24 = vunpack.c.3.s8 %v272_v6  ;;  %vm293_vm4 = vcmp.gt.f32.partialorder %v289_v17, 1.001e-05 }
  0x30   : > { %vm294_vm5 = vcmp.gt.f32.partialorder %v290_v18, 1.001e-05  ;;  %vm295_vm6 = vcmp.gt.f32.partialorder %v291_v19, 1.001e-05  ;;  %vm1004_vm8 = vmand %vm982_vm0, %vm293_vm4  ;;  %vm309_vm9 = vcmp.ge.s32.totalorder %v273_v12, 2  ;;  %vm310_vm10 = vcmp.ge.s32.totalorder %v274_v16, 2 }
  0x31   : > { %vm998_vm7 = vcmp.gt.f32.partialorder %v292_v23, 1.001e-05  ;;  %vm311_vm11 = vcmp.ge.s32.totalorder %v275_v20, 2  ;;  %vm1010_vm12 = vmand %vm986_vm1, %vm294_vm5  ;;  %v301_v28 = vsel %vm1004_vm8, %v268_v0, 0.5  ;;  %vm312_vm13 = vcmp.ge.s32.totalorder %v276_v24, 2  ;;  %s750_s6 = sshra.s32 %s424_s4, 4  ;;  %s751_s6 = int_to_ptr.hbm [resolvable:$true] %s750_s6 }
  0x32   : > { %v578_v30 = vsel %vm309_vm9, 1.0, %v858_v29  ;;  %vm1018_vm14 = vmand %vm990_vm2, %vm295_vm6  ;;  %v302_v32 = vsel %vm1010_vm12, %v269_v1, 0.5  ;;  %v579_v33 = vsel %vm310_vm10, 1.0, %v858_v29  ;;  %v580_v34 = vsel %vm311_vm11, 1.0, %v858_v29  ;;  %s752_s7 = scalar_lea.hbm %s751_s6, 8  ;;  %s756_s18 = scalar_lea.hbm %s1148_s3, 16 }
  0x33   : > { %v321_v35 = vsub.f32 1.0, %v301_v28  ;;  %vm1028_vm15 = vmand %vm994_vm3, %vm998_vm7  ;;  %v303_v37 = vsel %vm1018_vm14, %v270_v2, 0.5  ;;  %vm1034_vm0 = vcmp.ge.s32.totalorder %v273_v12, 1  ;;  %v581_v39 = vsel %vm312_vm13, 1.0, %v858_v29  ;;  %p753_p4 = scmp.ne.s32.totalorder %s751_s6, %s752_s7  ;;  %p757_p7 = scmp.lt.s32.totalorder %s751_s6, %s1148_s3 }
  0x34   : > { %v322_v40 = vsub.f32 1.0, %v302_v32  ;;  %v304_v41 = vsel %vm1028_vm15, %v271_v5, 0.5  ;;  %vm1040_vm1 = vcmp.ge.s32.totalorder %v274_v16, 1  ;;  %v323_v43 = vsub.f32 1.0, %v303_v37  ;;  %p758_p8 = scmp.lt.s32.totalorder %s756_s18, %s752_s7 }
  0x35   : > { %v333_v44 = vmul.f32 0.25, %v578_v30  ;;  %vm1044_vm2 = vcmp.ge.s32.totalorder %v275_v20, 1  ;;  %v324_v46 = vsub.f32 1.0, %v304_v41  ;;  %v334_v47 = vmul.f32 0.25, %v579_v33  ;;  %p754_p5 = pnand %p753_p4, %p930_p9 }
  0x36   : > { %v335_v48 = vmul.f32 0.25, %v580_v34  ;;  %vm1048_vm3 = vcmp.ge.s32.totalorder %v276_v24, 1  ;;  %v325_v50 = vsel %vm1034_vm0, %v301_v28, %v321_v35  ;;  %v336_v51 = vmul.f32 0.25, %v581_v39  ;;  %p759_p10 = por %p758_p8, %p757_p7 }
  0x37   : > { %v326_v52 = vsel %vm1040_vm1, %v302_v32, %v322_v40  ;;  %v329_v53 = vsub.f32 1.0, %v325_v50  ;;  %v327_v54 = vsel %vm1044_vm2, %v303_v37, %v323_v43  ;;  %v337_v56 = vsel %vm1034_vm0, %v333_v44, 0.75  ;;  %p755_p6 = pneg %p754_p5 }
  0x38   : > { %v330_v55 = vsub.f32 1.0, %v326_v52  ;;  %v328_v57 = vsel %vm1048_vm3, %v304_v41, %v324_v46  ;;  %v331_v58 = vsub.f32 1.0, %v327_v54  ;;  %v338_v59 = vsel %vm1040_vm1, %v334_v47, 0.75 }
  0x39   : > { %v339_v60 = vsel %vm1044_vm2, %v335_v48, 0.75  ;;  %v332_v61 = vsub.f32 1.0, %v328_v57  ;;  %v340_v62 = vsel %vm1048_vm3, %v336_v51, 0.75  ;;  %668 = vlog2.f32 %v325_v50  ;;  %p760_p13 = pnand %p759_p10, %p755_p6 }
  0x3a   : > { %v582_v63 = vsel %vm1004_vm8, 1.0, %v858_v29  ;;  %v341_v0 = vmul.f32 %v329_v53, %v329_v53  ;;  %v345_v1 = vsub.f32 0.0, %v337_v56  ;;  %670 = vlog2.f32 %v326_v52 }
  0x3b   : > { %v583_v2 = vsel %vm1010_vm12, 1.0, %v858_v29  ;;  %v342_v3 = vmul.f32 %v330_v55, %v330_v55  ;;  %v346_v4 = vsub.f32 0.0, %v338_v59  ;;  %672 = vlog2.f32 %v327_v54 }
  0x3c   : > { %v584_v5 = vsel %vm1018_vm14, 1.0, %v858_v29  ;;  %v343_v6 = vmul.f32 %v331_v58, %v331_v58  ;;  %v347_v7 = vsub.f32 0.0, %v339_v60  ;;  %674 = vlog2.f32 %v328_v57 }
  0x3d   : > { %v384_v8 = vadd.f32 %v583_v2, %v582_v63  ;;  %v344_v9 = vmul.f32 %v332_v61, %v332_v61  ;;  %v348_v10 = vsub.f32 0.0, %v340_v62  ;;  %v585_v11 = vsel %vm1028_vm15, 1.0, %v858_v29 }
  0x3e   : > { %v349_v12 = vmul.f32 %v345_v1, %v341_v0  ;;  %v350_v15 = vmul.f32 %v346_v4, %v342_v3  ;;  %v351_v17 = vmul.f32 %v347_v7, %v343_v6 }
  0x3f   : > { %v385_v13 = vadd.f32 %v584_v5, %v384_v8  ;;  %v669_v14 = vpop.eup %668  ;;  %v352_v21 = vmul.f32 %v348_v10, %v344_v9 }
  0x40   : > { %v671_v16 = vpop.eup %670  ;;  %v354_v18 = vmul.f32 0.6931472, %v669_v14 }
  0x41   : > { %v386_v19 = vadd.f32 %v585_v11, %v385_v13  ;;  %v673_v20 = vpop.eup %672  ;;  %v356_v22 = vmul.f32 0.6931472, %v671_v16 }
  0x42   : > { %v675_v23 = vpop.eup %674  ;;  %v358_v24 = vmul.f32 0.6931472, %v673_v20  ;;  %v361_v25 = vmul.f32 %v354_v18, %v349_v12 }
  0x43   : > { %v360_v28 = vmul.f32 0.6931472, %v675_v23  ;;  %v362_v29 = vmul.f32 %v356_v22, %v350_v15  ;;  %388 = vst [vmem:[%s258_s30] sm:$0xff] %v386_v19 }
  0x44   : > { %v363_v30 = vmul.f32 %v358_v24, %v351_v17  ;;  %v365_v32 = vsel %vm1004_vm8, %v361_v25, 0.0 }
  0x45   : > { %v364_v33 = vmul.f32 %v360_v28, %v352_v21  ;;  %v366_v34 = vsel %vm1010_vm12, %v362_v29, 0.0 }
  0x46   : > { %763 = shalt.err (!%p760_p13)
}
  0x47   : > { %598 = dma.vmem_to_hbm [thread:$0]  (%p930_p9), %s422_s22, 128, %s424_s4, %s395_s5   ;;  %v367_v26 = vsel %vm1018_vm14, %v363_v30, 0.0  ;;  %v378_v27 = vadd.f32 %v366_v34, %v365_v32  ;;  %v368_v35 = vsel %vm1028_vm15, %v364_v33, 0.0 }
  0x48   : > { %s405_s29 = scalar_lea.hbm %s1147_s2, %s588_s24  ;;  %s251_s30 = scalar_lea.vmem [#allocation7], %s974_s28 }
  0x49   : > { %v379_v37 = vadd.f32 %v378_v27, %v367_v26  ;;  %s407_s6 = sshll.u32 %s251_s30, 4  ;;  %s409_s7 = sshll.u32 %s405_s29, 4  ;;  %s408_s6 = int_to_ptr.vmem [resolvable:$true] %s407_s6  ;;  %s410_s7 = int_to_ptr.hbm [resolvable:$true] %s409_s7 }
  0x4a   : > { %s390_s22 = scalar_lea.sflag [#allocation4], %s965_s8  ;;  %s778_s4 = sshra.s32 %s410_s7, 4  ;;  %s779_s4 = int_to_ptr.hbm [resolvable:$true] %s778_s4 }
  0x4b   : > { %v380_v38 = vadd.f32 %v379_v37, %v368_v35  ;;  %s780_s15 = scalar_lea.hbm %s779_s4, 8  ;;  %s784_s9 = scalar_lea.hbm %s1147_s2, 16 }
  0x4c   : > { %p781_p0 = scmp.ne.s32.totalorder %s779_s4, %s780_s15  ;;  %p785_p3 = scmp.lt.s32.totalorder %s779_s4, %s1147_s2 }
  0x4d   : > { %382 = vst [vmem:[%s251_s30] sm:$0xff] %v380_v38  ;;  %p786_p4 = scmp.lt.s32.totalorder %s784_s9, %s780_s15 }
  0x4e   : > { %p782_p1 = pnand %p781_p0, %p930_p9 }
  0x4f   : > { %p787_p5 = por %p786_p4, %p785_p3 }
  0x50   : > { %p783_p2 = pneg %p782_p1 }
  0x52   : > { %p788_p6 = pnand %p787_p5, %p783_p2 }
  0x54   : > { %791 = shalt.err (!%p788_p6)
}
  0x55   : > { %597 = dma.vmem_to_hbm [thread:$0]  (%p930_p9), %s408_s6, 128, %s410_s7, %s390_s22  }
  0x56 PF: > { %s435_s8 = sand.u32 1, %s834_s12   ;;  %p609_p7 = pnand %p563_p12, %p937_p11 }
  0x57   : > { %s436_s18 = scalar_lea.sflag [#allocation4], %s435_s8 }
  0x58   : > { %p610_p8 = pneg %p609_p7 }
  0x5a   : > { %825 = dma.done.wait (%p610_p8), %s436_s18, 128  }
  0x5b   : > { %827 = vsyncadd (%p610_p8), %s436_s18, 4294967168  ;;  %s446_s10 = scalar_lea.sflag [#allocation9], %s435_s8 }
  0x5c   : > { %829 = dma.done.wait (%p610_p8), %s446_s10, 128  }
  0x5d   : > { %831 = vsyncadd (%p610_p8), %s446_s10, 4294967168  ;;  %s26_s17 = sadd.s32 1, %s854_s17   ;;  %s1180_s12 = smov %s838_s13 }
  0x5e   : > { %p23_p10 = scmp.ge.s32.totalorder %s26_s17, 4   ;;  %s1181_s13 = smov %s842_s14 }
  0x5f   : > { %s1182_s14 = smov %s935_s26  ;;  %s1183_s15 = smov %s850_s16 }
  0x60   : > { %s1184_s16 = smov %s1186_s20  ;;  %25 = sbr.rel (!%p23_p10) target bundleno = 10 (0xa), region = 107 }
  0x65   :  { %452 = vsyncpa [#allocation3], 1 }
  0x66   :  { %454 = vsyncpa [#allocation3 + $0x1], 1 }
  0x67   :  { %455 = vsyncpa [#allocation6], 1 }
  0x68   :  { %457 = vsyncpa [#allocation6 + $0x1], 1 }
  0x69   :  { %458 = vsyncpa [#allocation4], 1 }
  0x6a   :  { %460 = vsyncpa [#allocation4 + $0x1], 1 }
  0x6b   :  { %461 = vsyncpa [#allocation9], 1 }
  0x6c   :  { %463 = vsyncpa [#allocation9 + $0x1], 1 }

</bundles_post_ra>
